<compile_context>
chip_gen: v7x
topology: tpu7x:2x2x1
jax: 0.10.0
libtpu: 0.0.40
codegen_flags: <defaults>
</compile_context>

<pallas_src>
import functools
import math

import jax
import jax.numpy as jnp
from jax.experimental import pallas as pl
from jax.experimental.pallas import tpu as pltpu


_LANES = 128
_SUBLANES = 8


def _lcm(a, b):
    return a * b // math.gcd(a, b)


def _cdiv(a, b):
    return -(-a // b)


@functools.lru_cache(maxsize=None)
def _hw_defaults():
    """(target_tile_rows, vmem_limit_bytes), tiered by VMEM capacity.

    v5e/v6e (128 MiB VMEM): 8192-row (4 MiB f32) input blocks, 64 MiB limit.
    v7x      (64 MiB VMEM): 4096-row (2 MiB f32) input blocks, 48 MiB limit.
    """
    try:
        vmem_cap = int(pltpu.get_tpu_info().vmem_capacity_bytes)
    except Exception:
        vmem_cap = 64 * 1024 * 1024
    if vmem_cap >= 96 * 1024 * 1024:
        return 8192, 64 * 1024 * 1024
    return 4096, 48 * 1024 * 1024


def _pick_tile_rows(rows, pw_period, target_cfg):
    """Pick (tile_rows, num_tiles) for a (rows, 128) slab.

    Multi-tile tiles are a multiple of lcm(8, pw_period) so the resident
    pos_weight table lines up on every grid step and the sublane constraint
    holds; the last block may be partial (masked in-kernel).
    """
    unit = _lcm(_SUBLANES, pw_period)
    target = unit * max(1, target_cfg // unit)
    if rows > target:
        return target, _cdiv(rows, target)
    # Fits in a single block.  If the input is big enough that per-step
    # overhead (~0.35 us) is negligible, still emit two grid steps so both
    # v7x TensorCores get work under the "parallel" axis.
    if rows >= 2 * unit and rows >= 1024:
        half = unit * _cdiv(_cdiv(rows, 2), unit)
        if half < rows:
            return half, _cdiv(rows, half)
    return rows, 1


# --------------------------------------------------------------------------
# Kernels
# --------------------------------------------------------------------------

def _loss_tile(x_ref, t_ref, pwm1_ref):
    """Element-wise weighted BCE-with-logits loss for one (tile_rows, 128) tile."""
    x = x_ref[...].astype(jnp.float32)
    t = t_ref[...].astype(jnp.float32)
    pwm1 = pwm1_ref[...]                       # (pos_weight - 1), f32, VMEM-resident
    # Stable softplus(-x): max(-x, 0) + log(1 + exp(-|x|))
    # (identical to log(exp(-max_val) + exp(-x - max_val)) + max_val).
    softplus = jnp.maximum(-x, 0.0) + jnp.log(1.0 + jnp.exp(-jnp.abs(x)))
    return (1.0 - t) * x + (1.0 + pwm1 * t) * softplus


def _tile_partial(loss, tile_rows):
    """Reduce a (tile_rows, 128) tile to a lane-dense (8, 128) partial sum."""
    if tile_rows % _SUBLANES == 0:
        # Pure vreg adds over the leading axis; unmasked (8,128) result.
        return loss.reshape(tile_rows // _SUBLANES, _SUBLANES, _LANES).sum(axis=0)
    # Tiny single-tile fallback (tile_rows == rows < 8k and not a multiple of 8).
    partial = jnp.sum(loss, axis=0, keepdims=True)               # (1, 128)
    r8 = jax.lax.broadcasted_iota(jnp.int32, (_SUBLANES, _LANES), 0)
    return jnp.where(r8 == 0, partial, 0.0)


def _wbce_partial_sum_kernel(x_ref, t_ref, pwm1_ref, out_ref, *,
                             total, tile_rows, has_tail):
    """Per-tile partial sums, written as a lane-dense (8, 128) block.

    Padded / out-of-bounds elements are masked on the LAST grid step only.
    """
    loss = _loss_tile(x_ref, t_ref, pwm1_ref)

    if has_tail:
        i = pl.program_id(0)
        last = pl.num_programs(0) - 1

        @pl.when(i != last)
        def _():
            out_ref[...] = _tile_partial(loss, tile_rows)

        @pl.when(i == last)
        def _():
            row = jax.lax.broadcasted_iota(jnp.int32, loss.shape, 0)
            lane = jax.lax.broadcasted_iota(jnp.int32, loss.shape, 1)
            flat = (i * tile_rows + row) * _LANES + lane
            masked = jnp.where(flat < total, loss, 0.0)
            out_ref[...] = _tile_partial(masked, tile_rows)
    else:
        out_ref[...] = _tile_partial(loss, tile_rows)


def _wbce_loss_kernel(x_ref, t_ref, pwm1_ref, out_ref):
    """Unreduced loss, lane-dense output tile (tail sliced off in the wrapper)."""
    out_ref[...] = _loss_tile(x_ref, t_ref, pwm1_ref).astype(out_ref.dtype)


# --------------------------------------------------------------------------
# Wrapper
# --------------------------------------------------------------------------

def _pw_table(pos_weight_f32, c, tile_rows):
    idx = jnp.arange(tile_rows * _LANES, dtype=jnp.int32) % c
    return (jnp.take(pos_weight_f32, idx) - 1.0).reshape(tile_rows, _LANES)


def _pw_block_spec(tile_rows):
    # Constant index_map -> never refetched; single-buffer it to halve its
    # VMEM footprint (helps v7x's 64 MiB budget).  Fall back cleanly if this
    # jax version has no pipeline_mode on BlockSpec.
    try:
        return pl.BlockSpec((tile_rows, _LANES), lambda i: (0, 0),
                            pipeline_mode=pl.Buffered(1))
    except (TypeError, AttributeError):
        return pl.BlockSpec((tile_rows, _LANES), lambda i: (0, 0))


def weighted_bce_with_logits_loss(logits, targets, pos_weight, weight=None,
                                  size_average=True, reduce=True, *,
                                  target_tile_rows=None, vmem_limit_bytes=None,
                                  _pwm1_cache=None):
    """Pallas implementation of weighted_binary_cross_entropy_with_logits."""
    if targets.shape != logits.shape:
        raise ValueError(
            "Target size ({}) must be the same as input size ({})".format(
                targets.shape, logits.shape))
    if weight is not None:
        # TODO(synk): per-element `weight` buffer path not implemented.
        raise NotImplementedError("per-element `weight` is not supported")
    if logits.ndim != 2:
        raise ValueError("expected (batch, num_classes) logits, got {}".format(logits.shape))

    n, c = logits.shape
    pos_weight = jnp.asarray(pos_weight, dtype=jnp.float32).reshape(-1)
    if pos_weight.shape[0] != c:
        raise ValueError("pos_weight must have {} entries, got {}".format(c, pos_weight.shape))

    total = n * c
    if total >= 2 ** 31:
        raise ValueError("input too large for int32 flat indexing ({} elements)".format(total))

    default_rows, default_vmem = _hw_defaults()
    if target_tile_rows is None:
        target_tile_rows = default_rows
    if vmem_limit_bytes is None:
        vmem_limit_bytes = default_vmem

    rows = _cdiv(total, _LANES)
    # pos_weight pattern over the flattened array repeats every lcm(C, 128)
    # elements == C // gcd(C, 128) rows of 128 lanes.
    pw_period = c // math.gcd(c, _LANES)
    tile_rows, num_tiles = _pick_tile_rows(rows, pw_period, target_tile_rows)
    has_tail = (num_tiles * tile_rows * _LANES != total)

    # Lane-dense slabs in the *native* dtype.  No copy at all in the aligned
    # fast path (total % 128 == 0); otherwise pad only to the next 128-element
    # boundary.
    pad = rows * _LANES - total
    x_flat = logits.reshape(-1)
    t_flat = targets.reshape(-1)
    if pad:
        x_flat = jnp.pad(x_flat, (0, pad))
        t_flat = jnp.pad(t_flat, (0, pad))
    x2 = x_flat.reshape(rows, _LANES)
    t2 = t_flat.reshape(rows, _LANES)

    # Lane-periodic (pos_weight - 1) table, cached per (C, tile_rows).  Valid
    # for every tile: in the multi-tile case tile_rows is a multiple of
    # pw_period, so each tile starts on a pos_weight-period boundary.
    cache_key = (c, tile_rows)
    if _pwm1_cache is not None and cache_key in _pwm1_cache:
        pwm1_tile = _pwm1_cache[cache_key]
    else:
        pwm1_tile = _pw_table(pos_weight, c, tile_rows)
        if _pwm1_cache is not None:
            _pwm1_cache[cache_key] = pwm1_tile

    in_specs = [
        pl.BlockSpec((tile_rows, _LANES), lambda i: (i, 0)),
        pl.BlockSpec((tile_rows, _LANES), lambda i: (i, 0)),
        _pw_block_spec(tile_rows),           # VMEM-resident pos_weight table
    ]
    compiler_params = pltpu.CompilerParams(
        dimension_semantics=("parallel",),
        vmem_limit_bytes=vmem_limit_bytes,
    )

    if reduce:
        kernel = functools.partial(_wbce_partial_sum_kernel,
                                   total=total, tile_rows=tile_rows,
                                   has_tail=has_tail)
        partials = pl.pallas_call(
            kernel,
            out_shape=jax.ShapeDtypeStruct((num_tiles * _SUBLANES, _LANES),
                                           jnp.float32),
            grid=(num_tiles,),
            in_specs=in_specs,
            out_specs=pl.BlockSpec((_SUBLANES, _LANES), lambda i: (i, 0)),
            compiler_params=compiler_params,
        )(x2, t2, pwm1_tile)
        s = jnp.sum(partials)                 # tiny final reduce over partials
        if size_average:
            return s / jnp.float32(total)
        return s

    loss2 = pl.pallas_call(
        _wbce_loss_kernel,
        out_shape=jax.ShapeDtypeStruct((rows, _LANES), logits.dtype),
        grid=(num_tiles,),
        in_specs=in_specs,
        out_specs=pl.BlockSpec((tile_rows, _LANES), lambda i: (i, 0)),
        compiler_params=compiler_params,
    )(x2, t2, pwm1_tile)
    loss_flat = loss2.reshape(-1)
    if pad:
        loss_flat = loss_flat[:total]
    return loss_flat.reshape(n, c)


class WeightedBCEWithLogitsLoss:
    """Mirror of the PyTorch module (pos_weight path; `weight=` unsupported)."""

    def __init__(self, pos_weight, weight=None, size_average=True, reduce=True):
        if weight is not None:
            # TODO(synk): per-element `weight` buffer path not implemented.
            raise NotImplementedError("per-element `weight` is not supported")
        self.pos_weight = jnp.asarray(pos_weight, dtype=jnp.float32).reshape(-1)
        self.weight = None
        self.size_average = size_average
        self.reduce = reduce
        self._pwm1_cache = {}   # (num_classes, tile_rows) -> resident pw table

    def __call__(self, inputs, targets):
        return weighted_bce_with_logits_loss(
            inputs, targets, self.pos_weight,
            size_average=self.size_average, reduce=self.reduce,
            _pwm1_cache=self._pwm1_cache)


# --------------------------------------------------------------------------
# Self-check
# --------------------------------------------------------------------------

def _reference(logits, targets, pos_weight_row):
    logits = logits.astype(jnp.float32)
    targets = targets.astype(jnp.float32)
    max_val = jnp.maximum(-logits, 0.0)
    log_weight = 1.0 + (pos_weight_row - 1.0) * targets
    return (1.0 - targets) * logits + log_weight * (
        jnp.log(jnp.exp(-max_val) + jnp.exp(-logits - max_val)) + max_val)


if __name__ == "__main__":
    key = jax.random.PRNGKey(0)
    k1, k2, k3 = jax.random.split(key, 3)

    N, C = 8, 12  # batch x AU classes
    logits = jax.random.normal(k1, (N, C), dtype=jnp.float32) * 2.0
    targets = (jax.random.uniform(k2, (N, C)) > 0.5).astype(jnp.float32)
    pos_weight = 0.5 + jax.random.uniform(k3, (C,), dtype=jnp.float32) * 2.0

    ref_loss = _reference(logits, targets, pos_weight.reshape(1, C))

    # reduce=True (mean) path, single small tile.
    loss_fn = WeightedBCEWithLogitsLoss(pos_weight)
    out = jax.block_until_ready(loss_fn(logits, targets))
    assert jnp.allclose(out, jnp.mean(ref_loss), rtol=1e-5, atol=1e-5), out

    # reduce=False (per-element) path.
    loss_fn_elem = WeightedBCEWithLogitsLoss(pos_weight, reduce=False)
    out_elem = jax.block_until_ready(loss_fn_elem(logits, targets))
    assert jnp.allclose(out_elem, ref_loss, rtol=1e-5, atol=1e-5)

    # total % 128 == 0 fast path (no pad, no tail mask), sum reduction.
    N2 = 32
    kl2, kt2 = jax.random.split(jax.random.PRNGKey(1))
    logits2 = jax.random.normal(kl2, (N2, C), dtype=jnp.float32) * 3.0
    targets2 = (jax.random.uniform(kt2, (N2, C)) > 0.5).astype(jnp.float32)
    ref2 = _reference(logits2, targets2, pos_weight.reshape(1, C))
    sum_fn = WeightedBCEWithLogitsLoss(pos_weight, size_average=False)
    out2 = jax.block_until_ready(sum_fn(logits2, targets2))
    assert jnp.allclose(out2, jnp.sum(ref2), rtol=1e-4, atol=1e-3)
    out2_elem = jax.block_until_ready(
        weighted_bce_with_logits_loss(logits2, targets2, pos_weight, reduce=False))
    assert jnp.allclose(out2_elem, ref2, rtol=1e-5, atol=1e-5)

    # Forced multi-tile path: partial last block, last-step tail mask,
    # reshape-based (8,128) partial sums.
    N3 = 500
    kl3, kt3 = jax.random.split(jax.random.PRNGKey(2))
    logits3 = jax.random.normal(kl3, (N3, C), dtype=jnp.float32)
    targets3 = (jax.random.uniform(kt3, (N3, C)) > 0.5).astype(jnp.float32)
    ref3 = _reference(logits3, targets3, pos_weight.reshape(1, C))
    out3 = jax.block_until_ready(weighted_bce_with_logits_loss(
        logits3, targets3, pos_weight, target_tile_rows=32))
    assert jnp.allclose(out3, jnp.mean(ref3), rtol=1e-4, atol=1e-4)
    out3_elem = jax.block_until_ready(weighted_bce_with_logits_loss(
        logits3, targets3, pos_weight, reduce=False, target_tile_rows=32))
    assert jnp.allclose(out3_elem, ref3, rtol=1e-5, atol=1e-5)

    # bf16 inputs fed in their native dtype (f32 math in-kernel).
    out_bf16 = jax.block_until_ready(weighted_bce_with_logits_loss(
        logits.astype(jnp.bfloat16), targets.astype(jnp.bfloat16), pos_weight))
    assert jnp.allclose(out_bf16, jnp.mean(ref_loss), rtol=2e-2, atol=2e-2)

    print("KERNEL_OK")
</pallas_src>

<mosaic_0001>
module attributes {stable_mosaic.version = 11 : i64} {
  func.func @_wbce_partial_sum_kernel(%arg0: i32, %arg1: memref<1x128xf32, #tpu.memory_space<vmem>>, %arg2: memref<1x128xf32, #tpu.memory_space<vmem>>, %arg3: memref<1x128xf32, #tpu.memory_space<vmem>>, %arg4: memref<8x128xf32, #tpu.memory_space<vmem>>) attributes {dimension_semantics = [#tpu.dimension_semantics<parallel>], iteration_bounds = array<i64: 1>, scalar_prefetch = 0 : i64, scratch_operands = 0 : i64, tpu.core_type = #tpu.core_type<tc>, window_params = [{transform_indices = @transform_0, window_bounds = array<i64: 1, 128>}, {transform_indices = @transform_1, window_bounds = array<i64: 1, 128>}, {pipeline_mode = #tpu.pipeline_mode<synchronous>, transform_indices = @transform_2, window_bounds = array<i64: 1, 128>}, {transform_indices = @transform_3, window_bounds = array<i64: 8, 128>}]} {
    %c0 = arith.constant 0 : index
    %c0_0 = arith.constant 0 : index
    %0 = vector.load %arg1[%c0, %c0_0] : memref<1x128xf32, #tpu.memory_space<vmem>>, vector<1x128xf32>
    %c0_1 = arith.constant 0 : index
    %c0_2 = arith.constant 0 : index
    %1 = vector.load %arg2[%c0_1, %c0_2] : memref<1x128xf32, #tpu.memory_space<vmem>>, vector<1x128xf32>
    %c0_3 = arith.constant 0 : index
    %c0_4 = arith.constant 0 : index
    %2 = vector.load %arg3[%c0_3, %c0_4] : memref<1x128xf32, #tpu.memory_space<vmem>>, vector<1x128xf32>
    %cst = arith.constant 0.000000e+00 : f32
    %3 = vector.broadcast %cst : f32 to vector<1x128xf32>
    %4 = arith.subf %3, %0 : vector<1x128xf32>
    %cst_5 = arith.constant 0.000000e+00 : f32
    %5 = vector.broadcast %cst_5 : f32 to vector<1x128xf32>
    %6 = arith.maximumf %4, %5 : vector<1x128xf32>
    %7 = math.absf %0 : vector<1x128xf32>
    %cst_6 = arith.constant 0.000000e+00 : f32
    %8 = vector.broadcast %cst_6 : f32 to vector<1x128xf32>
    %9 = arith.subf %8, %7 : vector<1x128xf32>
    %10 = math.exp %9 : vector<1x128xf32>
    %cst_7 = arith.constant 1.000000e+00 : f32
    %11 = vector.broadcast %cst_7 : f32 to vector<1x128xf32>
    %12 = arith.addf %11, %10 : vector<1x128xf32>
    %13 = math.log %12 : vector<1x128xf32>
    %14 = arith.addf %6, %13 : vector<1x128xf32>
    %cst_8 = arith.constant 1.000000e+00 : f32
    %15 = vector.broadcast %cst_8 : f32 to vector<1x128xf32>
    %16 = arith.subf %15, %1 : vector<1x128xf32>
    %17 = arith.mulf %16, %0 : vector<1x128xf32>
    %18 = arith.mulf %2, %1 : vector<1x128xf32>
    %cst_9 = arith.constant 1.000000e+00 : f32
    %19 = vector.broadcast %cst_9 : f32 to vector<1x128xf32>
    %20 = arith.addf %19, %18 : vector<1x128xf32>
    %21 = arith.mulf %20, %14 : vector<1x128xf32>
    %22 = arith.addf %17, %21 : vector<1x128xf32>
    %c0_i32 = arith.constant 0 : i32
    %23 = arith.cmpi ne, %arg0, %c0_i32 : i32
    %24 = arith.extui %23 : i1 to i32
    %c0_i32_10 = arith.constant 0 : i32
    %25 = arith.cmpi ne, %24, %c0_i32_10 : i32
    scf.if %25 {
      %cst_13 = arith.constant dense<0.000000e+00> : vector<128xf32>
      %29 = vector.multi_reduction <add>, %22, %cst_13 [0] : vector<1x128xf32> to vector<128xf32>
      %30 = vector.shape_cast %29 : vector<128xf32> to vector<1x128xf32>
      %31 = tpu.iota {dimensions = array<i32: 0>} : vector<8x128xi32>
      %c0_i32_14 = arith.constant 0 : i32
      %32 = vector.broadcast %c0_i32_14 : i32 to vector<8x128xi32>
      %33 = arith.cmpi eq, %31, %32 : vector<8x128xi32>
      %cst_15 = arith.constant 0.000000e+00 : f32
      %34 = vector.shape_cast %30 : vector<1x128xf32> to vector<1x128xf32>
      %35 = vector.broadcast %34 : vector<1x128xf32> to vector<8x128xf32>
      %36 = vector.broadcast %cst_15 : f32 to vector<8x128xf32>
      %37 = arith.select %33, %35, %36 : vector<8x128xi1>, vector<8x128xf32>
      %c0_16 = arith.constant 0 : index
      %c0_17 = arith.constant 0 : index
      %38 = vector.load %arg4[%c0_16, %c0_17] : memref<8x128xf32, #tpu.memory_space<vmem>>, vector<8x128xf32>
      tpu.vector_store %arg4[%c0_16, %c0_17], %37 {strides = array<i32>} : memref<8x128xf32, #tpu.memory_space<vmem>>, vector<8x128xf32>,
    } else {
    }
    %c0_i32_11 = arith.constant 0 : i32
    %26 = arith.cmpi eq, %arg0, %c0_i32_11 : i32
    %27 = arith.extui %26 : i1 to i32
    %c0_i32_12 = arith.constant 0 : i32
    %28 = arith.cmpi ne, %27, %c0_i32_12 : i32
    scf.if %28 {
      %29 = tpu.iota {dimensions = array<i32: 0>} : vector<1x128xi32>
      %30 = tpu.iota {dimensions = array<i32: 1>} : vector<1x128xi32>
      %c1_i32 = arith.constant 1 : i32
      %31 = arith.muli %arg0, %c1_i32 : i32
      %32 = vector.broadcast %31 : i32 to vector<1x128xi32>
      %33 = arith.addi %32, %29 : vector<1x128xi32>
      %c128_i32 = arith.constant 128 : i32
      %34 = vector.broadcast %c128_i32 : i32 to vector<1x128xi32>
      %35 = arith.muli %33, %34 : vector<1x128xi32>
      %36 = arith.addi %35, %30 : vector<1x128xi32>
      %c96_i32 = arith.constant 96 : i32
      %37 = vector.broadcast %c96_i32 : i32 to vector<1x128xi32>
      %38 = arith.cmpi slt, %36, %37 : vector<1x128xi32>
      %cst_13 = arith.constant 0.000000e+00 : f32
      %39 = vector.broadcast %cst_13 : f32 to vector<1x128xf32>
      %40 = arith.select %38, %22, %39 : vector<1x128xi1>, vector<1x128xf32>
      %cst_14 = arith.constant dense<0.000000e+00> : vector<128xf32>
      %41 = vector.multi_reduction <add>, %40, %cst_14 [0] : vector<1x128xf32> to vector<128xf32>
      %42 = vector.shape_cast %41 : vector<128xf32> to vector<1x128xf32>
      %43 = tpu.iota {dimensions = array<i32: 0>} : vector<8x128xi32>
      %c0_i32_15 = arith.constant 0 : i32
      %44 = vector.broadcast %c0_i32_15 : i32 to vector<8x128xi32>
      %45 = arith.cmpi eq, %43, %44 : vector<8x128xi32>
      %cst_16 = arith.constant 0.000000e+00 : f32
      %46 = vector.shape_cast %42 : vector<1x128xf32> to vector<1x128xf32>
      %47 = vector.broadcast %46 : vector<1x128xf32> to vector<8x128xf32>
      %48 = vector.broadcast %cst_16 : f32 to vector<8x128xf32>
      %49 = arith.select %45, %47, %48 : vector<8x128xi1>, vector<8x128xf32>
      %c0_17 = arith.constant 0 : index
      %c0_18 = arith.constant 0 : index
      %50 = vector.load %arg4[%c0_17, %c0_18] : memref<8x128xf32, #tpu.memory_space<vmem>>, vector<8x128xf32>
      tpu.vector_store %arg4[%c0_17, %c0_18], %49 {strides = array<i32>} : memref<8x128xf32, #tpu.memory_space<vmem>>, vector<8x128xf32>,
    } else {
    }
    return
  }
  func.func @transform_0(%arg0: i32) -> (i32, i32) {
    %c0_i32 = arith.constant 0 : i32
    %c0_i32_0 = arith.constant 0 : i32
    return %arg0, %c0_i32 : i32, i32
  }
  func.func @transform_1(%arg0: i32) -> (i32, i32) {
    %c0_i32 = arith.constant 0 : i32
    %c0_i32_0 = arith.constant 0 : i32
    return %arg0, %c0_i32 : i32, i32
  }
  func.func @transform_2(%arg0: i32) -> (i32, i32) {
    %c0_i32 = arith.constant 0 : i32
    %c0_i32_0 = arith.constant 0 : i32
    %c0_i32_1 = arith.constant 0 : i32
    return %c0_i32, %c0_i32_0 : i32, i32
  }
  func.func @transform_3(%arg0: i32) -> (i32, i32) {
    %c0_i32 = arith.constant 0 : i32
    %c0_i32_0 = arith.constant 0 : i32
    return %arg0, %c0_i32 : i32, i32
  }
}

</mosaic_0001>

<bundles_post_ra>
// kernel: tpu_custom_call.1
= control target key start
LH: loop header
LB: loop body
LE: loop exit
PB: predicated region body
PF: predicated region fallthrough
CT: control target
= control target key end

     0   :  { %8 = vsyncpa [#allocation3], 0  ;;  %s205_s0 = inlined_call_operand.hbm [shape: f32[1,128], index: 0, kind: input, shape index: {}]   ;;  %s206_s1 = inlined_call_operand.vmem [shape: f32[1,128], index: 1, kind: input, shape index: {}]   ;;  %s207_s2 = inlined_call_operand.vmem [shape: f32[1,128], index: 2, kind: input, shape index: {}]   ;;  %s208_s3 = inlined_call_operand.hbm [shape: f32[8,128], index: 3, kind: output, shape index: {}]  }
   0x1   :  { %9 = vsyncpa [#allocation4], 0  ;;  %s153_s12 = smov [#allocation2]   ;;  %s105_s16 = scalar_lea.hbm %s205_s0, 16 }
   0x2   :  { %s16_s13 = sshll.u32 %s153_s12, 4  ;;  %p106_p0 = scmp.ne.s32.totalorder %s205_s0, %s105_s16  ;;  %s17_s13 = int_to_ptr.vmem [resolvable:$true] %s16_s13 }
   0x3   :  { %p109_p1 = scmp.lt.u32.totalorder %s105_s16, %s205_s0 }
   0x5   :  { %p111_p2 = pnand %p109_p1, %p106_p0 }
   0x7   :  { %114 = shalt.err (!%p111_p2)
}
   0x8   :  { %s115_s21 = scalar_lea.vmem %s17_s13, 16  ;;  %s119_s22 = scalar_lea.vmem %s17_s13, 32 }
   0x9   :  { %p116_p3 = scmp.ne.s32.totalorder %s17_s13, %s115_s21  ;;  %p120_p4 = scmp.lt.s32.totalorder %s17_s13, %s17_s13 }
   0xa   :  { %p121_p5 = scmp.lt.s32.totalorder %s119_s22, %s115_s21 }
   0xc   :  { %p122_p6 = por %p121_p5, %p120_p4 }
   0xe   :  { %p123_p7 = pnand %p122_p6, %p116_p3 }
  0x10   :  { %126 = shalt.err (!%p123_p7)
}
  0x11   :  { %19 = dma.hbm_to_vmem [thread:$0]  %s205_s0, 16, %s17_s13, [#allocation3]  }
  0x12   :  { %149 = dma.done.wait [#allocation3], 16  }
  0x13   :  { %150 = vsyncadd [#allocation3], 4294967280  ;;  %v27_v0 = vld [vmem:[#allocation2] sm:$0x1]  ;;  %v66_v6 = vlaneseq  ;;  %s154_s0 = smov [#allocation5]  }
  0x14   :  { %v32_v1 = vand.u32 2147483647, %v27_v0  ;;  %v28_v7 = vld [vmem:[%s206_s1] sm:$0x1]  ;;  %v30_v10 = vsub.f32 0.0, %v27_v0  ;;  %s90_s1 = sshll.u32 %s154_s0, 4  ;;  %s91_s1 = int_to_ptr.vmem [resolvable:$true] %s90_s1 }
  0x15   :  { %v29_v8 = vld [vmem:[%s207_s2] sm:$0x1]  ;;  %v67_v9 = vshrl.u32 %v66_v6, 7  ;;  %v69_v12 = vand.u32 127, %v66_v6  ;;  %v40_v15 = vsub.f32 1.0, %v28_v7  ;;  %s127_s2 = scalar_lea.vmem %s91_s1, 128  ;;  %p132_p9 = scmp.lt.s32.totalorder %s91_s1, %s91_s1 }
  0x16   :  { %v33_v2 = vsub.f32 0.0, %v32_v1  ;;  %v42_v11 = vmul.f32 %v29_v8, %v28_v7  ;;  %v31_v14 = vmax.f32 %v30_v10, 0.0  ;;  %p128_p8 = scmp.ne.s32.totalorder %s91_s1, %s127_s2  ;;  %p133_p10 = scmp.lt.s32.totalorder %s127_s2, %s127_s2 }
  0x17   :  { %v72_v13 = vmul.u32 128, %v67_v9  ;;  %v41_v21 = vmul.f32 %v40_v15, %v27_v0  ;;  %v80_v23 = vsub.s32 0, %v67_v9  ;;  %vm77_vm1 = vcmp.eq.s32.totalorder %v67_v9, 0 }
  0x18   :  { %v34_v3 = vmul.f32 1.442695, %v33_v2  ;;  %v43_v18 = vadd.f32 1.0, %v42_v11  ;;  %p134_p11 = por %p133_p10, %p132_p9 }
  0x19   :  { %v73_v19 = vadd.s32 %v72_v13, %v69_v12 }
  0x1a   :  { %101 = vpow2.f32 %v34_v3  ;;  %p135_p12 = pnand %p134_p11, %p128_p8 }
  0x1b   :  { %vm74_vm0 = vcmp.lt.s32.totalorder %v73_v19, 96 }
  0x24   :  { %v102_v4 = vpop.eup %101 }
  0x25   :  { %v36_v5 = vadd.f32 1.0, %v102_v4 }
  0x27   :  { %103 = vlog2.f32 %v36_v5 }
  0x31   :  { %v104_v16 = vpop.eup %103 }
  0x32   :  { %v38_v17 = vmul.f32 0.6931472, %v104_v16 }
  0x34   :  { %v39_v20 = vadd.f32 %v38_v17, %v31_v14 }
  0x36   :  { %v44_v22 = vmul.f32 %v43_v18, %v39_v20 }
  0x38   :  { %v45_v24 = vadd.f32 %v44_v22, %v41_v21 }
  0x3a   :  { %v75_v25 = vsel %vm74_vm0, %v45_v24, 0.0 }
  0x3b   :  { %v81_v26 = vrot.slane %v75_v25, %v80_v23 }
  0x3d   :  { %v82_v27 = vsel %vm77_vm1, %v81_v26, 0.0 }
  0x3e   :  { %83 = vst [vmem:[#allocation5] sm:$0xff] %v82_v27 }
  0x3f   :  { %138 = shalt.err (!%p135_p12)
}
  0x40   :  { %s139_s4 = scalar_lea.hbm %s208_s3, 128 }
  0x41   :  { %p140_p13 = scmp.ne.s32.totalorder %s208_s3, %s139_s4  ;;  %p143_p0 = scmp.lt.u32.totalorder %s139_s4, %s208_s3 }
  0x43   :  { %p145_p1 = pnand %p143_p0, %p140_p13 }
  0x45   :  { %148 = shalt.err (!%p145_p1)
}
  0x46   :  { %93 = dma.vmem_to_hbm [thread:$0]  %s91_s1, 128, %s208_s3, [#allocation4]  }
  0x47   :  { %151 = dma.done.wait [#allocation4], 128  }
  0x48   :  { %152 = vsyncadd [#allocation4], 4294967168 }
  0x49   :  { %97 = vsyncpa [#allocation3], 1 }
  0x4a   :  { %98 = vsyncpa [#allocation4], 1 }

</bundles_post_ra>
